<compile_context>
chip_gen: v7x
topology: tpu7x:2x2x1
jax: 0.10.0
libtpu: 0.0.40
codegen_flags: <defaults>
</compile_context>

<pallas_src>
import functools

import jax
import jax.numpy as jnp
from jax import lax
from jax.experimental import pallas as pl
from jax.experimental.pallas import tpu as pltpu


def _make_ntxent_kernel(tmp: float, tq: int, tk: int):
    inv_tmp = float(1.0 / tmp)

    def kernel(z1_ref, z2t_ref, out_ref, z1n_ref, m_ref, l_ref, p_ref):
        i = pl.program_id(0)
        j = pl.program_id(1)

        @pl.when(j == 0)
        def _init():
            # Normalize the resident z1 row tile once per row tile and cache it.
            # F.normalize(z, p=2, dim=1): z / max(||z||, 1e-12)
            #   == z * rsqrt(max(||z||^2, 1e-24)); fold 1/tmp into the scale.
            z1 = z1_ref[...].astype(jnp.float32)
            ss1 = jnp.sum(z1 * z1, axis=1, keepdims=True)
            scale1 = lax.rsqrt(jnp.maximum(ss1, jnp.float32(1e-24))) * jnp.float32(inv_tmp)
            z1n_ref[...] = (z1 * scale1).astype(z1n_ref.dtype)
            m_ref[...] = jnp.full_like(m_ref, -jnp.inf)
            l_ref[...] = jnp.zeros_like(l_ref)
            p_ref[...] = jnp.zeros_like(p_ref)

        # (tq, Dp) @ (Dp, tk) -> (tq, tk); rhs already in MXU-native [K, N] layout.
        sim = jnp.dot(z1n_ref[...], z2t_ref[...],
                      preferred_element_type=jnp.float32)

        def online_update(s):
            m_prev = m_ref[...]
            m_new = jnp.maximum(m_prev, jnp.max(s, axis=1, keepdims=True))
            l_ref[...] = (jnp.exp(m_prev - m_new) * l_ref[...]
                          + jnp.sum(jnp.exp(s - m_new), axis=1, keepdims=True))
            m_ref[...] = m_new

        # The diagonal and the positive-pair column (row ^ 1, always inside the row
        # tile's own index range since tq is even) can only appear in column tiles
        # that overlap [i*tq, i*tq + tq).  Skip all that work elsewhere.
        row_lo = i * tq
        col_lo = j * tk
        overlap = jnp.logical_and(col_lo < row_lo + tq, row_lo < col_lo + tk)

        @pl.when(overlap)
        def _diag_tile():
            r = lax.broadcasted_iota(jnp.int32, (tq, 1), 0) + row_lo
            c = lax.broadcasted_iota(jnp.int32, (1, tk), 1) + col_lo
            sim_m = jnp.where(r == c, sim - jnp.float32(1e8), sim)
            # label[k] = k ^ 1; the picked logit is never on the diagonal.
            p_ref[...] += jnp.sum(
                jnp.where(c == (r ^ 1), sim_m, jnp.float32(0.0)),
                axis=1, keepdims=True)
            online_update(sim_m)

        @pl.when(jnp.logical_not(overlap))
        def _off_diag_tile():
            online_update(sim)

        @pl.when(j == pl.num_programs(1) - 1)
        def _finalize():
            # per-row cross-entropy term: logsumexp(sim[i, :]) - sim[i, label[i]]
            out_ref[...] = (m_ref[...] + jnp.log(l_ref[...])) - p_ref[...]

    return kernel


def _pick_tile(n: int, candidates, prefer_multi: bool = False) -> int:
    cands = [t for t in candidates if t <= n and n % t == 0]
    if prefer_multi:
        for t in cands:
            if n // t >= 2:
                return t
    if cands:
        return cands[0]
    return n


def ntxent_loss(z1: jax.Array, z2: jax.Array, tmp: float = 0.5, *,
                tq: int | None = None, tk: int | None = None,
                use_bf16_matmul: bool = False) -> jax.Array:
    assert z1.shape == z2.shape and z1.ndim == 2
    n, d = z1.shape
    assert n % 2 == 0, "NT-Xent pairing requires an even batch size"

    mm_dtype = jnp.bfloat16 if (z1.dtype == jnp.bfloat16 or use_bf16_matmul) else jnp.float32

    # Tile sizes.  tq: large resident row tile (halves z2 HBM re-reads as it doubles),
    # but prefer >= 2 row tiles so v7x's second core is used.  tk: 256 first, and it is
    # the lane dim of the transposed z2, so it must be a multiple of 128 (or the full N).
    if tq is None:
        tq_cands = (512, 256, 128, 64, 32, 16) + (() if mm_dtype == jnp.bfloat16 else (8,))
        tq = _pick_tile(n, tq_cands, prefer_multi=True)
    if tk is None:
        tk = _pick_tile(n, (256, 512, 128))
    assert n % tq == 0 and n % tk == 0
    assert tq == n or tq % 8 == 0
    assert tk == n or tk % 128 == 0
    if mm_dtype == jnp.bfloat16:
        assert tq == n or tq % 16 == 0, "bf16 sublane packing wants tq % 16 == 0"

    # Zero-pad the feature dim to a multiple of 128 (lane / MXU-K dim); zeros change
    # neither norms nor dot products.
    dp = max(128, ((d + 127) // 128) * 128)
    z1p = z1 if dp == d else jnp.pad(z1, ((0, 0), (0, dp - d)))

    # Pre-normalize z2 once (O(N*D)) and transpose to (Dp, N): removes the per-step
    # re-normalization of streamed z2 tiles and presents the MXU-native rhs layout.
    z2f = z2.astype(jnp.float32)
    z2n = z2f / jnp.maximum(jnp.linalg.norm(z2f, axis=1, keepdims=True), 1e-12)
    z2t = z2n.T.astype(mm_dtype)
    if dp != d:
        z2t = jnp.pad(z2t, ((0, dp - d), (0, 0)))

    grid = (n // tq, n // tk)

    # Explicit VMEM budget: double-buffered input tiles + cached normalized row tile
    # + sim/exp temporaries; keep within v7x's 64 MiB physical (and lift v5e's 16 MiB
    # default scoped limit).
    in_bytes = jnp.dtype(z1p.dtype).itemsize
    mm_bytes = jnp.dtype(mm_dtype).itemsize
    est = (2 * tq * dp * in_bytes        # double-buffered z1 row tiles
           + 2 * dp * tk * mm_bytes      # double-buffered z2t col tiles
           + tq * dp * mm_bytes          # cached normalized z1 scratch
           + 2 * tq * tk * 4             # sim / exp temporaries
           + 16 * tq * 4)                # m/l/p/out slivers
    vmem_limit = int(min(max(2 * est, 32 * 1024 * 1024), 48 * 1024 * 1024))

    per_row = pl.pallas_call(
        _make_ntxent_kernel(tmp, tq, tk),
        out_shape=jax.ShapeDtypeStruct((n, 1), jnp.float32),
        grid_spec=pltpu.PrefetchScalarGridSpec(
            num_scalar_prefetch=0,
            grid=grid,
            in_specs=[
                pl.BlockSpec((tq, dp), lambda i, j: (i, 0)),   # z1 row tile (resident over j)
                pl.BlockSpec((dp, tk), lambda i, j: (0, j)),   # normalized z2^T col tile
            ],
            out_specs=pl.BlockSpec((tq, 1), lambda i, j: (i, 0)),
            scratch_shapes=[
                pltpu.VMEM((tq, dp), mm_dtype),     # cached normalized/scaled z1 tile
                pltpu.VMEM((tq, 1), jnp.float32),   # running max
                pltpu.VMEM((tq, 1), jnp.float32),   # running sum-exp
                pltpu.VMEM((tq, 1), jnp.float32),   # picked (positive-pair) logit
            ],
        ),
        compiler_params=pltpu.CompilerParams(
            dimension_semantics=("parallel", "arbitrary"),
            vmem_limit_bytes=vmem_limit),
    )(z1p, z2t)

    return jnp.mean(per_row[:, 0])


def _ntxent_loss_ref(z1, z2, tmp=0.5):
    # pure-JAX reference mirroring the PyTorch forward
    z1 = z1 / jnp.maximum(jnp.linalg.norm(z1, axis=1, keepdims=True), 1e-12)
    z2 = z2 / jnp.maximum(jnp.linalg.norm(z2, axis=1, keepdims=True), 1e-12)
    sim = (z1 @ z2.T) / tmp
    n = sim.shape[0]
    sim = sim - jnp.eye(n, dtype=sim.dtype) * 1e8
    labels = jnp.arange(n) + jnp.where(jnp.arange(n) % 2 == 0, 1, -1)
    lse = jax.scipy.special.logsumexp(sim, axis=1)
    picked = sim[jnp.arange(n), labels]
    return jnp.mean(lse - picked)


if __name__ == "__main__":
    key = jax.random.PRNGKey(0)
    k1, k2, k3, k4 = jax.random.split(key, 4)

    # Small shapes implied by the module's usage (projection-head embeddings).
    N, D = 8, 32
    z1 = jax.random.normal(k1, (N, D), dtype=jnp.float32)
    z2 = jax.random.normal(k2, (N, D), dtype=jnp.float32)
    loss = ntxent_loss(z1, z2, tmp=0.5)
    jax.block_until_ready(loss)
    ref = _ntxent_loss_ref(z1, z2, tmp=0.5)
    assert jnp.allclose(loss, ref, rtol=2e-4, atol=2e-4), (loss, ref)

    # Exercise the tiled online-logsumexp path and the overlap-guarded
    # diagonal/positive-pair selects: grid = (4, 2) row x col tiles.
    N2, D2 = 256, 64
    a = jax.random.normal(k3, (N2, D2), dtype=jnp.float32)
    b = jax.random.normal(k4, (N2, D2), dtype=jnp.float32)
    loss2 = ntxent_loss(a, b, tmp=0.5, tq=64, tk=128)
    jax.block_until_ready(loss2)
    ref2 = _ntxent_loss_ref(a, b, tmp=0.5)
    assert jnp.allclose(loss2, ref2, rtol=2e-4, atol=2e-4), (loss2, ref2)

    # Default (auto) tile pick at a larger size.
    loss3 = ntxent_loss(a, b, tmp=0.5)
    jax.block_until_ready(loss3)
    assert jnp.allclose(loss3, ref2, rtol=2e-4, atol=2e-4), (loss3, ref2)

    print("KERNEL_OK")
</pallas_src>

<mosaic_0001>
module attributes {stable_mosaic.version = 11 : i64} {
  func.func @kernel(%arg0: i32, %arg1: i32, %arg2: memref<8x128xf32, #tpu.memory_space<vmem>>, %arg3: memref<128x8xf32, #tpu.memory_space<vmem>>, %arg4: memref<8x1xf32, #tpu.memory_space<vmem>>, %arg5: memref<8x128xf32, #tpu.memory_space<vmem>>, %arg6: memref<8x1xf32, #tpu.memory_space<vmem>>, %arg7: memref<8x1xf32, #tpu.memory_space<vmem>>, %arg8: memref<8x1xf32, #tpu.memory_space<vmem>>) attributes {dimension_semantics = [#tpu.dimension_semantics<parallel>, #tpu.dimension_semantics<arbitrary>], iteration_bounds = array<i64: 1, 1>, scalar_prefetch = 0 : i64, scratch_operands = 4 : i64, tpu.core_type = #tpu.core_type<tc>, window_params = [{transform_indices = @transform_0, window_bounds = array<i64: 8, 128>}, {transform_indices = @transform_1, window_bounds = array<i64: 128, 8>}, {transform_indices = @transform_2, window_bounds = array<i64: 8, 1>}]} {
    %c0_i32 = arith.constant 0 : i32
    %0 = arith.cmpi eq, %arg1, %c0_i32 : i32
    %1 = arith.extui %0 : i1 to i32
    %c0_i32_0 = arith.constant 0 : i32
    %2 = arith.cmpi ne, %1, %c0_i32_0 : i32
    scf.if %2 {
      %c0_11 = arith.constant 0 : index
      %c0_12 = arith.constant 0 : index
      %21 = vector.load %arg2[%c0_11, %c0_12] : memref<8x128xf32, #tpu.memory_space<vmem>>, vector<8x128xf32>
      %22 = arith.mulf %21, %21 : vector<8x128xf32>
      %cst_13 = arith.constant dense<0.000000e+00> : vector<8xf32>
      %23 = vector.multi_reduction <add>, %22, %cst_13 [1] : vector<8x128xf32> to vector<8xf32>
      %24 = vector.shape_cast %23 : vector<8xf32> to vector<8x1xf32>
      %cst_14 = arith.constant 1.000000e-24 : f32
      %25 = vector.broadcast %cst_14 : f32 to vector<8x1xf32>
      %26 = arith.maximumf %24, %25 : vector<8x1xf32>
      %27 = math.rsqrt %26 : vector<8x1xf32>
      %cst_15 = arith.constant 2.000000e+00 : f32
      %28 = vector.broadcast %cst_15 : f32 to vector<8x1xf32>
      %29 = arith.mulf %27, %28 : vector<8x1xf32>
      %30 = vector.broadcast %29 : vector<8x1xf32> to vector<8x128xf32>
      %31 = arith.mulf %21, %30 : vector<8x128xf32>
      %c0_16 = arith.constant 0 : index
      %c0_17 = arith.constant 0 : index
      %32 = vector.load %arg5[%c0_16, %c0_17] : memref<8x128xf32, #tpu.memory_space<vmem>>, vector<8x128xf32>
      tpu.vector_store %arg5[%c0_16, %c0_17], %31 {strides = array<i32>} : memref<8x128xf32, #tpu.memory_space<vmem>>, vector<8x128xf32>,
      %cst_18 = arith.constant 0xFF800000 : f32
      %33 = vector.broadcast %cst_18 : f32 to vector<8x1xf32>
      %c0_19 = arith.constant 0 : index
      %c0_20 = arith.constant 0 : index
      %34 = vector.load %arg6[%c0_19, %c0_20] : memref<8x1xf32, #tpu.memory_space<vmem>>, vector<8x1xf32>
      tpu.vector_store %arg6[%c0_19, %c0_20], %33 {strides = array<i32>} : memref<8x1xf32, #tpu.memory_space<vmem>>, vector<8x1xf32>,
      %cst_21 = arith.constant 0.000000e+00 : f32
      %35 = vector.broadcast %cst_21 : f32 to vector<8x1xf32>
      %c0_22 = arith.constant 0 : index
      %c0_23 = arith.constant 0 : index
      %36 = vector.load %arg7[%c0_22, %c0_23] : memref<8x1xf32, #tpu.memory_space<vmem>>, vector<8x1xf32>
      tpu.vector_store %arg7[%c0_22, %c0_23], %35 {strides = array<i32>} : memref<8x1xf32, #tpu.memory_space<vmem>>, vector<8x1xf32>,
      %cst_24 = arith.constant 0.000000e+00 : f32
      %37 = vector.broadcast %cst_24 : f32 to vector<8x1xf32>
      %c0_25 = arith.constant 0 : index
      %c0_26 = arith.constant 0 : index
      %38 = vector.load %arg8[%c0_25, %c0_26] : memref<8x1xf32, #tpu.memory_space<vmem>>, vector<8x1xf32>
      tpu.vector_store %arg8[%c0_25, %c0_26], %37 {strides = array<i32>} : memref<8x1xf32, #tpu.memory_space<vmem>>, vector<8x1xf32>,
    } else {
    }
    %c0 = arith.constant 0 : index
    %c0_1 = arith.constant 0 : index
    %3 = vector.load %arg5[%c0, %c0_1] : memref<8x128xf32, #tpu.memory_space<vmem>>, vector<8x128xf32>
    %c0_2 = arith.constant 0 : index
    %c0_3 = arith.constant 0 : index
    %4 = vector.load %arg3[%c0_2, %c0_3] : memref<128x8xf32, #tpu.memory_space<vmem>>, vector<128x8xf32>
    %cst = arith.constant dense<0.000000e+00> : vector<8x8xf32>
    %5 = tpu.matmul %3, %4, %cst {dimension_numbers = #tpu.dot_dimension_numbers<[1], [0], [0], [1], [0, 0, 1, 1], [], []>} : vector<8x128xf32>, vector<128x8xf32>, vector<8x8xf32> -> vector<8x8xf32>
    %c8_i32 = arith.constant 8 : i32
    %6 = arith.muli %arg0, %c8_i32 : i32
    %c8_i32_4 = arith.constant 8 : i32
    %7 = arith.muli %arg1, %c8_i32_4 : i32
    %c8_i32_5 = arith.constant 8 : i32
    %8 = arith.addi %6, %c8_i32_5 : i32
    %9 = arith.cmpi slt, %7, %8 : i32
    %c8_i32_6 = arith.constant 8 : i32
    %10 = arith.addi %7, %c8_i32_6 : i32
    %11 = arith.cmpi slt, %6, %10 : i32
    %12 = arith.andi %9, %11 : i1
    %13 = arith.extui %12 : i1 to i32
    %c0_i32_7 = arith.constant 0 : i32
    %14 = arith.cmpi ne, %13, %c0_i32_7 : i32
    scf.if %14 {
      %21 = tpu.iota {dimensions = array<i32: 0>} : vector<8x1xi32>
      %22 = vector.broadcast %6 : i32 to vector<8x1xi32>
      %23 = arith.addi %21, %22 : vector<8x1xi32>
      %24 = tpu.iota {dimensions = array<i32: 1>} : vector<1x8xi32>
      %25 = vector.broadcast %7 : i32 to vector<1x8xi32>
      %26 = arith.addi %24, %25 : vector<1x8xi32>
      %27 = vector.broadcast %23 : vector<8x1xi32> to vector<8x8xi32>
      %28 = vector.broadcast %26 : vector<1x8xi32> to vector<8x8xi32>
      %29 = arith.cmpi eq, %27, %28 : vector<8x8xi32>
      %cst_11 = arith.constant 1.000000e+08 : f32
      %30 = vector.broadcast %cst_11 : f32 to vector<8x8xf32>
      %31 = arith.subf %5, %30 : vector<8x8xf32>
      %32 = arith.select %29, %31, %5 : vector<8x8xi1>, vector<8x8xf32>
      %c0_12 = arith.constant 0 : index
      %c0_13 = arith.constant 0 : index
      %33 = vector.load %arg8[%c0_12, %c0_13] : memref<8x1xf32, #tpu.memory_space<vmem>>, vector<8x1xf32>
      %c1_i32 = arith.constant 1 : i32
      %34 = vector.broadcast %c1_i32 : i32 to vector<8x1xi32>
      %35 = arith.xori %23, %34 : vector<8x1xi32>
      %36 = vector.broadcast %26 : vector<1x8xi32> to vector<8x8xi32>
      %37 = vector.broadcast %35 : vector<8x1xi32> to vector<8x8xi32>
      %38 = arith.cmpi eq, %36, %37 : vector<8x8xi32>
      %cst_14 = arith.constant 0.000000e+00 : f32
      %39 = vector.broadcast %cst_14 : f32 to vector<8x8xf32>
      %40 = arith.select %38, %32, %39 : vector<8x8xi1>, vector<8x8xf32>
      %cst_15 = arith.constant dense<0.000000e+00> : vector<8xf32>
      %41 = vector.multi_reduction <add>, %40, %cst_15 [1] : vector<8x8xf32> to vector<8xf32>
      %42 = vector.shape_cast %41 : vector<8xf32> to vector<8x1xf32>
      %43 = arith.addf %33, %42 : vector<8x1xf32>
      %c0_16 = arith.constant 0 : index
      %c0_17 = arith.constant 0 : index
      %44 = vector.load %arg8[%c0_16, %c0_17] : memref<8x1xf32, #tpu.memory_space<vmem>>, vector<8x1xf32>
      tpu.vector_store %arg8[%c0_16, %c0_17], %43 {strides = array<i32>} : memref<8x1xf32, #tpu.memory_space<vmem>>, vector<8x1xf32>,
      %c0_18 = arith.constant 0 : index
      %c0_19 = arith.constant 0 : index
      %45 = vector.load %arg6[%c0_18, %c0_19] : memref<8x1xf32, #tpu.memory_space<vmem>>, vector<8x1xf32>
      %cst_20 = arith.constant dense<0xFF800000> : vector<8xf32>
      %46 = vector.multi_reduction <maximumf>, %32, %cst_20 [1] : vector<8x8xf32> to vector<8xf32>
      %47 = vector.shape_cast %46 : vector<8xf32> to vector<8x1xf32>
      %48 = arith.maximumf %45, %47 : vector<8x1xf32>
      %49 = arith.subf %45, %48 : vector<8x1xf32>
      %50 = math.exp %49 : vector<8x1xf32>
      %c0_21 = arith.constant 0 : index
      %c0_22 = arith.constant 0 : index
      %51 = vector.load %arg7[%c0_21, %c0_22] : memref<8x1xf32, #tpu.memory_space<vmem>>, vector<8x1xf32>
      %52 = arith.mulf %50, %51 : vector<8x1xf32>
      %53 = vector.broadcast %48 : vector<8x1xf32> to vector<8x8xf32>
      %54 = arith.subf %32, %53 : vector<8x8xf32>
      %55 = math.exp %54 : vector<8x8xf32>
      %cst_23 = arith.constant dense<0.000000e+00> : vector<8xf32>
      %56 = vector.multi_reduction <add>, %55, %cst_23 [1] : vector<8x8xf32> to vector<8xf32>
      %57 = vector.shape_cast %56 : vector<8xf32> to vector<8x1xf32>
      %58 = arith.addf %52, %57 : vector<8x1xf32>
      %c0_24 = arith.constant 0 : index
      %c0_25 = arith.constant 0 : index
      %59 = vector.load %arg7[%c0_24, %c0_25] : memref<8x1xf32, #tpu.memory_space<vmem>>, vector<8x1xf32>
      tpu.vector_store %arg7[%c0_24, %c0_25], %58 {strides = array<i32>} : memref<8x1xf32, #tpu.memory_space<vmem>>, vector<8x1xf32>,
      %c0_26 = arith.constant 0 : index
      %c0_27 = arith.constant 0 : index
      %60 = vector.load %arg6[%c0_26, %c0_27] : memref<8x1xf32, #tpu.memory_space<vmem>>, vector<8x1xf32>
      tpu.vector_store %arg6[%c0_26, %c0_27], %48 {strides = array<i32>} : memref<8x1xf32, #tpu.memory_space<vmem>>, vector<8x1xf32>,
    } else {
    }
    %true = arith.constant true
    %15 = arith.xori %12, %true : i1
    %16 = arith.extui %15 : i1 to i32
    %c0_i32_8 = arith.constant 0 : i32
    %17 = arith.cmpi ne, %16, %c0_i32_8 : i32
    scf.if %17 {
      %c0_11 = arith.constant 0 : index
      %c0_12 = arith.constant 0 : index
      %21 = vector.load %arg6[%c0_11, %c0_12] : memref<8x1xf32, #tpu.memory_space<vmem>>, vector<8x1xf32>
      %cst_13 = arith.constant dense<0xFF800000> : vector<8xf32>
      %22 = vector.multi_reduction <maximumf>, %5, %cst_13 [1] : vector<8x8xf32> to vector<8xf32>
      %23 = vector.shape_cast %22 : vector<8xf32> to vector<8x1xf32>
      %24 = arith.maximumf %21, %23 : vector<8x1xf32>
      %25 = arith.subf %21, %24 : vector<8x1xf32>
      %26 = math.exp %25 : vector<8x1xf32>
      %c0_14 = arith.constant 0 : index
      %c0_15 = arith.constant 0 : index
      %27 = vector.load %arg7[%c0_14, %c0_15] : memref<8x1xf32, #tpu.memory_space<vmem>>, vector<8x1xf32>
      %28 = arith.mulf %26, %27 : vector<8x1xf32>
      %29 = vector.broadcast %24 : vector<8x1xf32> to vector<8x8xf32>
      %30 = arith.subf %5, %29 : vector<8x8xf32>
      %31 = math.exp %30 : vector<8x8xf32>
      %cst_16 = arith.constant dense<0.000000e+00> : vector<8xf32>
      %32 = vector.multi_reduction <add>, %31, %cst_16 [1] : vector<8x8xf32> to vector<8xf32>
      %33 = vector.shape_cast %32 : vector<8xf32> to vector<8x1xf32>
      %34 = arith.addf %28, %33 : vector<8x1xf32>
      %c0_17 = arith.constant 0 : index
      %c0_18 = arith.constant 0 : index
      %35 = vector.load %arg7[%c0_17, %c0_18] : memref<8x1xf32, #tpu.memory_space<vmem>>, vector<8x1xf32>
      tpu.vector_store %arg7[%c0_17, %c0_18], %34 {strides = array<i32>} : memref<8x1xf32, #tpu.memory_space<vmem>>, vector<8x1xf32>,
      %c0_19 = arith.constant 0 : index
      %c0_20 = arith.constant 0 : index
      %36 = vector.load %arg6[%c0_19, %c0_20] : memref<8x1xf32, #tpu.memory_space<vmem>>, vector<8x1xf32>
      tpu.vector_store %arg6[%c0_19, %c0_20], %24 {strides = array<i32>} : memref<8x1xf32, #tpu.memory_space<vmem>>, vector<8x1xf32>,
    } else {
    }
    %c0_i32_9 = arith.constant 0 : i32
    %18 = arith.cmpi eq, %arg1, %c0_i32_9 : i32
    %19 = arith.extui %18 : i1 to i32
    %c0_i32_10 = arith.constant 0 : i32
    %20 = arith.cmpi ne, %19, %c0_i32_10 : i32
    scf.if %20 {
      %c0_11 = arith.constant 0 : index
      %c0_12 = arith.constant 0 : index
      %21 = vector.load %arg6[%c0_11, %c0_12] : memref<8x1xf32, #tpu.memory_space<vmem>>, vector<8x1xf32>
      %c0_13 = arith.constant 0 : index
      %c0_14 = arith.constant 0 : index
      %22 = vector.load %arg7[%c0_13, %c0_14] : memref<8x1xf32, #tpu.memory_space<vmem>>, vector<8x1xf32>
      %23 = math.log %22 : vector<8x1xf32>
      %24 = arith.addf %21, %23 : vector<8x1xf32>
      %c0_15 = arith.constant 0 : index
      %c0_16 = arith.constant 0 : index
      %25 = vector.load %arg8[%c0_15, %c0_16] : memref<8x1xf32, #tpu.memory_space<vmem>>, vector<8x1xf32>
      %26 = arith.subf %24, %25 : vector<8x1xf32>
      %c0_17 = arith.constant 0 : index
      %c0_18 = arith.constant 0 : index
      %27 = vector.load %arg4[%c0_17, %c0_18] : memref<8x1xf32, #tpu.memory_space<vmem>>, vector<8x1xf32>
      tpu.vector_store %arg4[%c0_17, %c0_18], %26 {strides = array<i32>} : memref<8x1xf32, #tpu.memory_space<vmem>>, vector<8x1xf32>,
    } else {
    }
    return
  }
  func.func @transform_0(%arg0: i32, %arg1: i32) -> (i32, i32) {
    %c0_i32 = arith.constant 0 : i32
    %c0_i32_0 = arith.constant 0 : i32
    return %arg0, %c0_i32 : i32, i32
  }
  func.func @transform_1(%arg0: i32, %arg1: i32) -> (i32, i32) {
    %c0_i32 = arith.constant 0 : i32
    %c0_i32_0 = arith.constant 0 : i32
    return %c0_i32, %arg1 : i32, i32
  }
  func.func @transform_2(%arg0: i32, %arg1: i32) -> (i32, i32) {
    %c0_i32 = arith.constant 0 : i32
    %c0_i32_0 = arith.constant 0 : i32
    return %arg0, %c0_i32 : i32, i32
  }
}

</mosaic_0001>

<bundles_post_ra>
// kernel: tpu_custom_call.1
= control target key start
LH: loop header
LB: loop body
LE: loop exit
PB: predicated region body
PF: predicated region fallthrough
CT: control target
= control target key end

     0   :  { %v308_v1 = vmov 0.0|0.0   ;;  %vm24_vm0 = vcmask 7168   ;;  %v309_v27 = vmov 0.0   ;;  %vm310_vm1 = vmmov 0   ;;  %s392_s0 = inlined_call_operand.vmem [shape: f32[8,128], index: 0, kind: input, shape index: {}]   ;;  %s393_s1 = inlined_call_operand.vmem [shape: f32[128,8], index: 1, kind: input, shape index: {}]   ;;  %s394_s2 = inlined_call_operand.vmem [shape: f32[8,1], index: 2, kind: output, shape index: {}]  }
   0x1   :  { %v15_v0 = vld [vmem:[%s392_s0] sm:$0xff]  ;;  %269 = vmatprep.subr.bf16.mxu0 %v308_v1  ;;  %v30_v3 = vld [vmem:[%s393_s1 + $0x8] sm:$0xff]  ;;  %v31_v6 = vld [vmem:[%s393_s1 + $0x10] sm:$0xff]  ;;  %26 = vst.msk [vmem:[#allocation4] sm:$0xff] %vm24_vm0, %v309_v27  ;;  %266 = vmatprep.mubr.msk.f32.mxu0 %vm310_vm1, %v309_v27  ;;  %v311_v33 = vmov -inf   ;;  %v125_v34 = vlaneseq  ;;  %vm140_vm3 = vcmask 64512  }
   0x2   :  { %v29_v2 = vld [vmem:[%s393_s1] sm:$0xff]  ;;  %v16_v4 = vmul.f32 %v15_v0, %v15_v0  ;;  %v32_v7 = vld [vmem:[%s393_s1 + $0x18] sm:$0xff]  ;;  %v34_v10 = vld [vmem:[%s393_s1 + $0x28] sm:$0xff]  ;;  %27 = vst.msk [vmem:[#allocation5] sm:$0xff] %vm24_vm0, %v309_v27  ;;  %v312_v45 = vmov 0  }
   0x3   :  { %v270_v5 = vpack.c.bf16 %v30_v3, %v29_v2  ;;  %v273_v8 = vpack.c.bf16 %v32_v7, %v31_v6  ;;  %v33_v9 = vld [vmem:[%s393_s1 + $0x20] sm:$0xff]  ;;  %v35_v12 = vld [vmem:[%s393_s1 + $0x30] sm:$0xff]  ;;  %v36_v13 = vld [vmem:[%s393_s1 + $0x38] sm:$0xff]  ;;  %25 = vst.msk [vmem:[#allocation3] sm:$0xff] %vm24_vm0, %v311_v33  ;;  %v126_v35 = vshrl.u32 %v125_v34, 7  ;;  %v130_v36 = vand.u32 127, %v125_v34  ;;  %298 = vset.pattern.permute.xlu1 %v312_v45  ;;  %299 = vset.pattern.permute.xlu0 %v312_v45 }
   0x4   :  { %17 = vadd.xlane.f32.xlu0 %v16_v4  ;;  %v276_v11 = vpack.c.bf16 %v34_v10, %v33_v9  ;;  %v279_v14 = vpack.c.bf16 %v36_v13, %v35_v12  ;;  %v37_v15 = vld [vmem:[%s393_s1 + $0x40] sm:$0xff]  ;;  %v38_v16 = vld [vmem:[%s393_s1 + $0x48] sm:$0xff]  ;;  %v39_v18 = vld [vmem:[%s393_s1 + $0x50] sm:$0xff] }
   0x5   :  { %271 = vmatpush3.bf16.msra.mxu0 %v270_v5  ;;  %v282_v17 = vpack.c.bf16 %v38_v16, %v37_v15  ;;  %v40_v19 = vld [vmem:[%s393_s1 + $0x58] sm:$0xff]  ;;  %v41_v21 = vld [vmem:[%s393_s1 + $0x60] sm:$0xff]  ;;  %v42_v22 = vld [vmem:[%s393_s1 + $0x68] sm:$0xff]  ;;  %v137_v37 = vxor.u32 1, %v126_v35  ;;  %vm133_vm2 = vcmp.eq.s32.totalorder %v126_v35, %v130_v36 }
   0x6   :  { %272 = vmatprep.subr.bf16.mxu0 %v308_v1  ;;  %v285_v20 = vpack.c.bf16 %v40_v19, %v39_v18  ;;  %v288_v23 = vpack.c.bf16 %v42_v22, %v41_v21  ;;  %v43_v24 = vld [vmem:[%s393_s1 + $0x70] sm:$0xff]  ;;  %v44_v25 = vld [vmem:[%s393_s1 + $0x78] sm:$0xff] }
   0x7   :  { %v291_v26 = vpack.c.bf16 %v44_v25, %v43_v24  ;;  %vm138_vm4 = vcmp.eq.s32.totalorder %v130_v36, %v137_v37 }
   0x8   :  { %v155_v60 = vld [vmem:[#allocation4] sm:$0xff] }
   0x9   :  { %274 = vmatpush3.bf16.msra.mxu0 %v273_v8  ;;  %v136_v49 = vld [vmem:[#allocation5] sm:$0xff] }
   0xa   :  { %275 = vmatprep.subr.bf16.mxu0 %v308_v1  ;;  %v147_v46 = vld [vmem:[#allocation3] sm:$0xff] }
   0xd   :  { %277 = vmatpush3.bf16.msra.mxu0 %v276_v11 }
   0xe   :  { %278 = vmatprep.subr.bf16.mxu0 %v308_v1 }
  0x11   :  { %280 = vmatpush3.bf16.msra.mxu0 %v279_v14 }
  0x12   :  { %281 = vmatprep.subr.bf16.mxu0 %v308_v1 }
  0x15   :  { %283 = vmatpush3.bf16.msra.mxu0 %v282_v17 }
  0x16   :  { %284 = vmatprep.subr.bf16.mxu0 %v308_v1 }
  0x19   :  { %286 = vmatpush3.bf16.msra.mxu0 %v285_v20 }
  0x1a   :  { %287 = vmatprep.subr.bf16.mxu0 %v308_v1 }
  0x1d   :  { %289 = vmatpush3.bf16.msra.mxu0 %v288_v23 }
  0x1e   :  { %290 = vmatprep.subr.bf16.mxu0 %v308_v1 }
  0x21   :  { %292 = vmatpush3.bf16.msra.mxu0 %v291_v26 }
  0x91   :  { %v18_v28 = vpop.xlane.xlu0 %17 }
  0x92   :  { %v19_v29 = vmax.f32 %v18_v28, 1e-24 }
  0x94   :  { %300 = vrsqrt.f32 %v19_v29 }
  0x9e   :  { %v301_v30 = vpop.eup %300 }
  0x9f   :  { %v21_v31 = vmul.f32 2.0, %v301_v30 }
  0xa1   :  { %v22_v32 = vmul.f32 %v21_v31, %v15_v0 }
  0xa3   :  { %267 = vmatmul.mubr.f32.vlgmr.msra.gmra.mrb[0].mxu0 %v22_v32 }
 0x176   :  { %v111_v38 = vpop.f32.mrb[0].mxu0 }
 0x177   :  { %v216_v39 = vadd.f32 -1e+08, %v111_v38  ;;  %v268_v40 = vpop.f32.mrb[1].mxu0 }
 0x179   :  { %v135_v41 = vsel %vm133_vm2, %v216_v39, %v111_v38 }
 0x17a   :  { %v148_v42 = vsel %vm140_vm3, %v135_v41, -inf  ;;  %v139_v43 = vsel %vm138_vm4, %v135_v41, 0.0 }
 0x17b   :  { %149 = vmax.xlane.f32.xlu0 %v148_v42  ;;  %v141_v44 = vsel %vm140_vm3, %v139_v43, 0.0 }
 0x17f   :  { %142 = vadd.xlane.f32.xlu0 %v141_v44 }
 0x208   :  { %v150_v47 = vpop.xlane.xlu0 %149 }
 0x209   :  { %v151_v48 = vmax.f32 %v147_v46, %v150_v47 }
 0x20b   :  { %v152_v50 = vsub.f32 %v147_v46, %v151_v48  ;;  %170 = vst.msk [vmem:[#allocation3] sm:$0xff] %vm24_vm0, %v151_v48  ;;  %159 = vperm.xlu1 %298, %v151_v48  }
 0x20c   :  { %v143_v51 = vpop.xlane.xlu0 %142 }
 0x20d   :  { %v144_v52 = vadd.f32 %v143_v51, %v136_v49  ;;  %v153_v58 = vmul.f32 1.442695, %v152_v50 }
 0x20f   :  { %146 = vst.msk [vmem:[#allocation5] sm:$0xff] %vm24_vm0, %v144_v52 }
 0x212   :  { %v203_v3 = vld [vmem:[#allocation3] sm:$0xff] }
 0x216   :  { %v208_v5 = vld [vmem:[#allocation5] sm:$0xff] }
 0x28a   :  { %v160_v53 = vpop.permute.xlu1 %159 }
 0x28b   :  { %v162_v54 = vsub.f32 %v135_v41, %v160_v53 }
 0x28d   :  { %v163_v55 = vmul.f32 1.442695, %v162_v54 }
 0x28f   :  { %302 = vpow2.f32 %v163_v55 }
 0x290   :  { %304 = vpow2.f32 %v153_v58 }
 0x299   :  { %v303_v56 = vpop.eup %302 }
 0x29a   :  { %v165_v57 = vsel %vm140_vm3, %v303_v56, 0.0  ;;  %v305_v59 = vpop.eup %304 }
 0x29b   :  { %166 = vadd.xlane.f32.xlu1 %v165_v57  ;;  %v156_v61 = vmul.f32 %v305_v59, %v155_v60 }
 0x328   :  { %v167_v62 = vpop.xlane.xlu1 %166 }
 0x329   :  { %v168_v63 = vadd.f32 %v167_v62, %v156_v61 }
 0x32b   :  { %169 = vst.msk [vmem:[#allocation4] sm:$0xff] %vm24_vm0, %v168_v63 }
 0x332   :  { %v204_v0 = vld [vmem:[#allocation4] sm:$0xff] }
 0x333   :  { %306 = vlog2.f32 %v204_v0 }
 0x33d   :  { %v307_v1 = vpop.eup %306 }
 0x33e   :  { %v206_v2 = vmul.f32 0.6931472, %v307_v1 }
 0x340   :  { %v207_v4 = vadd.f32 %v206_v2, %v203_v3 }
 0x342   :  { %v209_v6 = vsub.f32 %v207_v4, %v208_v5 }
 0x344   :  { %211 = vst.msk [vmem:[%s394_s2] sm:$0xff] %vm24_vm0, %v209_v6 }

</bundles_post_ra>
